<compile_context>
chip_gen: v7x
topology: tpu7x:2x2x1
jax: 0.10.0
libtpu: 0.0.40
codegen_flags: <defaults>
</compile_context>

<pallas_src>
import jax
import jax.numpy as jnp
from jax.experimental import pallas as pl
from jax.experimental.pallas import tpu as pltpu


def identity(x: jax.Array) -> jax.Array:
    """Faithful nn.Identity forward: a zero-cost no-op (no HBM traffic)."""
    return x


# ----------------------------- copy kernels ---------------------------------


def _whole_copy_kernel(x_hbm, o_hbm, sem):
    # Single HBM -> HBM DMA of the entire array.  No VMEM, no vector ops.
    cp = pltpu.make_async_copy(x_hbm, o_hbm, sem)
    cp.start()
    cp.wait()


def _make_chunked_copy_kernel(rows, chunk_rows):
    """HBM -> HBM DMA of one row-chunk per grid step (handles a ragged tail)."""
    num_chunks = pl.cdiv(rows, chunk_rows)
    rem = rows - (num_chunks - 1) * chunk_rows  # static tail size

    def kernel(x_hbm, o_hbm, sem):
        i = pl.program_id(0)
        start = i * chunk_rows
        if chunk_rows % 8 == 0:
            start = pl.multiple_of(start, 8)

        if rem == chunk_rows:  # uniform chunks
            cp = pltpu.make_async_copy(
                x_hbm.at[pl.ds(start, chunk_rows), :],
                o_hbm.at[pl.ds(start, chunk_rows), :],
                sem,
            )
            cp.start()
            cp.wait()
        else:
            last = num_chunks - 1

            @pl.when(i < last)
            def _():
                cp = pltpu.make_async_copy(
                    x_hbm.at[pl.ds(start, chunk_rows), :],
                    o_hbm.at[pl.ds(start, chunk_rows), :],
                    sem,
                )
                cp.start()
                cp.wait()

            @pl.when(i == last)
            def _():
                cp = pltpu.make_async_copy(
                    x_hbm.at[pl.ds(start, rem), :],
                    o_hbm.at[pl.ds(start, rem), :],
                    sem,
                )
                cp.start()
                cp.wait()

    return kernel


# ------------------------------- wrapper -------------------------------------

_LANE_CHOICES = (2048, 1024, 512, 256, 128)
_TARGET_CHUNK_BYTES = 16 * 1024 * 1024   # per-DMA chunk (no VMEM constraint)
_MEGACORE_MIN_BYTES = 2 * 1024 * 1024    # force >= 2 chunks above this (v7x: 2 TCs)


def identity_copy(x: jax.Array, *, min_pallas_bytes: int = 1 << 20) -> jax.Array:
    """Identity that materializes a new buffer via direct HBM->HBM DMAs."""
    orig_shape = x.shape
    n = int(x.size)
    if n == 0:
        return x

    itemsize = jnp.dtype(x.dtype).itemsize
    total_bytes = n * itemsize
    if total_bytes < min_pallas_bytes:
        # Kernel-launch overhead dominates for tiny arrays; let XLA copy.
        return jnp.copy(x)

    compiler_params = pltpu.CompilerParams(dimension_semantics=("parallel",))
    cost = pl.CostEstimate(flops=0, transcendentals=0,
                           bytes_accessed=2 * total_bytes)
    any_spec = pl.BlockSpec(memory_space=pl.ANY)
    sem = pltpu.SemaphoreType.DMA(())

    # Lane-dense 2D factorization (cols a multiple of 128) so chunks can be
    # row-sliced by the DMA.  No padding is ever introduced.
    cols = None
    for c in _LANE_CHOICES:
        if n % c == 0 and n // c >= 8:
            cols = c
            break

    use_whole = cols is None
    rows = chunk_rows = num_chunks = None
    if not use_whole:
        rows = n // cols
        row_bytes = cols * itemsize
        chunk_rows = max(8, (_TARGET_CHUNK_BYTES // row_bytes) // 8 * 8)
        chunk_rows = min(chunk_rows, rows)
        if chunk_rows >= rows and total_bytes >= _MEGACORE_MIN_BYTES and rows >= 16:
            # Keep >= 2 grid steps so both v7x TensorCores issue DMAs.
            chunk_rows = ((rows + 1) // 2 + 7) // 8 * 8
        num_chunks = pl.cdiv(rows, chunk_rows)
        if num_chunks == 1:
            use_whole = True

    if use_whole:
        # Single whole-array HBM->HBM DMA on the original shape (no reshape,
        # no padding) — exact 2x traffic even for odd sizes.
        return pl.pallas_call(
            _whole_copy_kernel,
            out_shape=jax.ShapeDtypeStruct(orig_shape, x.dtype),
            grid_spec=pltpu.PrefetchScalarGridSpec(
                num_scalar_prefetch=0,
                grid=(1,),
                in_specs=[any_spec],
                out_specs=any_spec,
                scratch_shapes=[sem],
            ),
            compiler_params=compiler_params,
            cost_estimate=cost,
        )(x)

    x2d = x.reshape(rows, cols)  # zero-copy for default-layout inputs
    out2d = pl.pallas_call(
        _make_chunked_copy_kernel(rows, chunk_rows),
        out_shape=jax.ShapeDtypeStruct((rows, cols), x.dtype),
        grid_spec=pltpu.PrefetchScalarGridSpec(
            num_scalar_prefetch=0,
            grid=(num_chunks,),
            in_specs=[any_spec],
            out_specs=any_spec,
            scratch_shapes=[sem],
        ),
        compiler_params=compiler_params,
        cost_estimate=cost,
    )(x2d)
    return out2d.reshape(orig_shape)


if __name__ == "__main__":
    key = jax.random.PRNGKey(0)
    x = jax.random.normal(key, (2, 4, 16, 16), dtype=jnp.float32)

    # Faithful nn.Identity forward (zero-cost pass-through).
    y = identity(x)

    # Force the Pallas DMA kernel even for the small demo input
    # (whole-array single-DMA path).
    y_small = identity_copy(x, min_pallas_bytes=0)
    jax.block_until_ready(y_small)

    # Larger input exercises the chunked multi-step path (incl. ragged tail,
    # and dual-TC DMA issue on v7x).
    xl = jax.random.normal(jax.random.PRNGKey(1), (520, 2048), dtype=jnp.float32)
    yl = identity_copy(xl)
    jax.block_until_ready(yl)

    assert y.shape == x.shape and y.dtype == x.dtype
    assert bool(jnp.all(y == x))
    assert y_small.shape == x.shape and y_small.dtype == x.dtype
    assert bool(jnp.all(y_small == x))
    assert yl.shape == xl.shape and yl.dtype == xl.dtype
    assert bool(jnp.all(yl == xl))
    print("KERNEL_OK")
</pallas_src>

<mosaic_0001>
module attributes {stable_mosaic.version = 11 : i64} {
  func.func @_whole_copy_kernel(%arg0: i32, %arg1: memref<2x4x16x16xf32, #tpu.memory_space<any>>, %arg2: memref<2x4x16x16xf32, #tpu.memory_space<any>>, %arg3: memref<!tpu.dma_semaphore, #tpu.memory_space<semaphore_mem>>) attributes {dimension_semantics = [#tpu.dimension_semantics<parallel>], iteration_bounds = array<i64: 1>, scalar_prefetch = 0 : i64, scratch_operands = 1 : i64, tpu.core_type = #tpu.core_type<tc>, window_params = [{}, {}]} {
    tpu.enqueue_dma source(%arg1 : memref<2x4x16x16xf32, #tpu.memory_space<any>>) target(%arg2 : memref<2x4x16x16xf32, #tpu.memory_space<any>>) target_semaphore(%arg3 : memref<!tpu.dma_semaphore, #tpu.memory_space<semaphore_mem>>)
    tpu.wait_dma2 semaphore(%arg3 : memref<!tpu.dma_semaphore, #tpu.memory_space<semaphore_mem>>) src(%arg1 : memref<2x4x16x16xf32, #tpu.memory_space<any>>) dst(%arg2 : memref<2x4x16x16xf32, #tpu.memory_space<any>>)
    return
  }
}

</mosaic_0001>

<bundles_post_ra>
// kernel: tpu_custom_call.1
= control target key start
LH: loop header
LB: loop body
LE: loop exit
PB: predicated region body
PF: predicated region fallthrough
CT: control target
= control target key end

     0   :  { %s36_s6 = smov [#allocation2]   ;;  %s37_s7 = smov [#allocation3]   ;;  %s55_s0 = inlined_call_operand.hbm [shape: f32[2,4,16,16], index: 0, kind: input, shape index: {}]   ;;  %s56_s1 = inlined_call_operand.hbm [shape: f32[2,4,16,16], index: 1, kind: output, shape index: {}]  }
   0x1   :  { %s38_s8 = smov 0  }
   0x2   :  { %18 = dma.general %s55_s0, 2048, %s56_s1, %s36_s6, %s37_s7, [#allocation4], %s38_s8, 0  }
   0x3   :  { %34 = dma.done.wait [#allocation2], 2048 }
   0x4   :  { %35 = vsyncadd [#allocation2], 4294965248 }
   0x5   :  { %24 = vsyncmov [#allocation2] }
   0x8   :  { %s25_s13 = vpop.sfrf %24 }
   0x9   :  { %p30_p0 = scmp.ne.s32.totalorder %s25_s13, 0 }
   0xb   :  { %29 = shalt.err (%p30_p0)  }

</bundles_post_ra>
